<compile_context>
chip_gen: v7x
topology: tpu7x:2x2x1
jax: 0.10.0
libtpu: 0.0.40
codegen_flags: <defaults>
</compile_context>

<pallas_src>
import jax
import jax.numpy as jnp
from jax.experimental import pallas as pl
from jax.experimental.pallas import tpu as pltpu

INPUT_DIM = 8                    # LunarLander-v2 observation space
HIDDEN_DIM = 128
OUTPUT_DIM = 4                   # LunarLander-v2 action space
FUSED_HIDDEN = 2 * HIDDEN_DIM    # actor lanes 0..127, critic lanes 128..255
OUT_LANES = 8                    # fused output: logits in lanes 0..3, value in lane 4, 5..7 zero
TM_MAX = 512                     # max batch tile (rows)


def _actor_critic_kernel(x_ref, w1_ref, b1_ref, s1_ref, w2_ref, b2_ref, s2_ref,
                         w3_ref, b3_ref, out_ref):
    # TODO(synk): nn.Dropout is identity in eval mode; training-mode RNG dropout not emitted.
    cdt = w1_ref.dtype                                                         # f32 or bf16
    x = x_ref[...].astype(cdt)                                                 # (TM, 8)
    h = jnp.dot(x, w1_ref[...], preferred_element_type=jnp.float32) + b1_ref[...]
    h = jnp.where(h >= 0.0, h, s1_ref[...] * h)                                # per-lane PReLU
    h = jnp.dot(h.astype(cdt), w2_ref[...],
                preferred_element_type=jnp.float32) + b2_ref[...]
    h = jnp.where(h >= 0.0, h, s2_ref[...] * h)
    out_ref[...] = (jnp.dot(h.astype(cdt), w3_ref[...],
                            preferred_element_type=jnp.float32)
                    + b3_ref[...]).astype(out_ref.dtype)                       # (TM, 8)


def _fuse_params(params, weight_dtype=jnp.float32):
    """Fuse actor+critic into one wide network with an 8-lane fused output."""
    (aw1, ab1, aw2, ab2, aw3, ab3,
     cw1, cb1, cw2, cb2, cw3, cb3, prelu) = params

    w1 = jnp.concatenate([aw1, cw1], axis=1)                                   # (8, 256)
    b1 = jnp.concatenate([ab1, cb1], axis=1)                                   # (1, 256)

    zero = jnp.zeros((HIDDEN_DIM, HIDDEN_DIM), jnp.float32)
    w2 = jnp.block([[aw2, zero], [zero, cw2]])                                 # (256, 256) block-diag
    b2 = jnp.concatenate([ab2, cb2], axis=1)                                   # (1, 256)

    w3 = jnp.zeros((FUSED_HIDDEN, OUT_LANES), jnp.float32)                     # (256, 8)
    w3 = w3.at[:HIDDEN_DIM, :OUTPUT_DIM].set(aw3)                              # logits -> lanes 0..3
    w3 = w3.at[HIDDEN_DIM:, OUTPUT_DIM:OUTPUT_DIM + 1].set(cw3)                # value  -> lane 4
    b3 = jnp.zeros((1, OUT_LANES), jnp.float32)
    b3 = b3.at[:, :OUTPUT_DIM].set(ab3)
    b3 = b3.at[:, OUTPUT_DIM:OUTPUT_DIM + 1].set(cb3)

    ones = jnp.ones((1, HIDDEN_DIM), jnp.float32)
    s1 = jnp.concatenate([prelu[0] * ones, prelu[2] * ones], axis=1)           # (1, 256)
    s2 = jnp.concatenate([prelu[1] * ones, prelu[3] * ones], axis=1)           # (1, 256)

    # Weights go through the MXU -> optionally bf16; biases/slopes stay f32 (VPU adds on the
    # f32 accumulator).
    w1 = w1.astype(weight_dtype)
    w2 = w2.astype(weight_dtype)
    w3 = w3.astype(weight_dtype)
    return w1, b1, s1, w2, b2, s2, w3, b3


def actor_critic_forward(state, params, *, use_bf16=False):
    """state: (B, INPUT_DIM) f32. Returns (action_pred (B,4), value_pred (B,1)).

    use_bf16=True halves weight DMA bytes and ~2-3x's MXU throughput on v6e/v7x, at the
    cost of ~1e-2-level relative error vs. the f32 reference.
    """
    B = state.shape[0]
    weight_dtype = jnp.bfloat16 if use_bf16 else jnp.float32
    w1, b1, s1, w2, b2, s2, w3, b3 = _fuse_params(params, weight_dtype)

    # Adaptive batch tile: multiple of 8 sublanes, capped at TM_MAX. Small batches run in a
    # single grid step; large batches get >=2 steps (megacore-splittable on v7x).
    tm = min(TM_MAX, ((B + 7) // 8) * 8)
    grid = (pl.cdiv(B, tm),)

    def resident(shape):
        # Parameters: same block every grid step -> stay VMEM-resident (no re-DMA).
        return pl.BlockSpec(shape, lambda i: (0, 0))

    fused = pl.pallas_call(
        _actor_critic_kernel,
        out_shape=jax.ShapeDtypeStruct((B, OUT_LANES), jnp.float32),
        grid=grid,
        in_specs=[
            pl.BlockSpec((tm, INPUT_DIM), lambda i: (i, 0)),   # state tile, pipelined
            resident((INPUT_DIM, FUSED_HIDDEN)),               # w1
            resident((1, FUSED_HIDDEN)),                       # b1
            resident((1, FUSED_HIDDEN)),                       # slope1
            resident((FUSED_HIDDEN, FUSED_HIDDEN)),            # w2
            resident((1, FUSED_HIDDEN)),                       # b2
            resident((1, FUSED_HIDDEN)),                       # slope2
            resident((FUSED_HIDDEN, OUT_LANES)),               # w3
            resident((1, OUT_LANES)),                          # b3
        ],
        out_specs=pl.BlockSpec((tm, OUT_LANES), lambda i: (i, 0)),
        compiler_params=pltpu.CompilerParams(
            dimension_semantics=("parallel",)),                # batch split across TCs on v7x
    )(state.astype(jnp.float32), w1, b1, s1, w2, b2, s2, w3, b3)

    action_pred = fused[:, :OUTPUT_DIM]
    value_pred = fused[:, OUTPUT_DIM:OUTPUT_DIM + 1]
    return action_pred, value_pred


def _init_linear(key, fan_in, fan_out):
    # PyTorch nn.Linear default: U(-1/sqrt(fan_in), 1/sqrt(fan_in)) for weight & bias.
    kw, kb = jax.random.split(key)
    bound = 1.0 / jnp.sqrt(jnp.float32(fan_in))
    w = jax.random.uniform(kw, (fan_in, fan_out), jnp.float32, -bound, bound)
    b = jax.random.uniform(kb, (1, fan_out), jnp.float32, -bound, bound)
    return w, b


def init_params(key):
    keys = jax.random.split(key, 6)
    # actor
    aw1, ab1 = _init_linear(keys[0], INPUT_DIM, HIDDEN_DIM)
    aw2, ab2 = _init_linear(keys[1], HIDDEN_DIM, HIDDEN_DIM)
    aw3, ab3 = _init_linear(keys[2], HIDDEN_DIM, OUTPUT_DIM)
    # critic
    cw1, cb1 = _init_linear(keys[3], INPUT_DIM, HIDDEN_DIM)
    cw2, cb2 = _init_linear(keys[4], HIDDEN_DIM, HIDDEN_DIM)
    cw3, cb3 = _init_linear(keys[5], HIDDEN_DIM, 1)
    # PReLU slopes: [actor_a1, actor_a2, critic_a1, critic_a2] (PyTorch default init 0.25)
    prelu = jnp.full((4,), 0.25, dtype=jnp.float32)
    return (aw1, ab1, aw2, ab2, aw3, ab3,
            cw1, cb1, cw2, cb2, cw3, cb3, prelu)


def _reference(state, params):
    (aw1, ab1, aw2, ab2, aw3, ab3,
     cw1, cb1, cw2, cb2, cw3, cb3, prelu) = params

    def prelu_f(h, a):
        return jnp.where(h >= 0.0, h, a * h)

    def mlp(x, w1, b1, w2, b2, w3, b3, a1, a2):
        h = prelu_f(x @ w1 + b1, a1)
        h = prelu_f(h @ w2 + b2, a2)
        return h @ w3 + b3

    act = mlp(state, aw1, ab1, aw2, ab2, aw3, ab3, prelu[0], prelu[1])
    val = mlp(state, cw1, cb1, cw2, cb2, cw3, cb3, prelu[2], prelu[3])
    return act, val


if __name__ == "__main__":
    key = jax.random.PRNGKey(0)
    k_state, k_params = jax.random.split(key)

    B = 2
    state = jax.random.normal(k_state, (B, INPUT_DIM), dtype=jnp.float32)
    params = init_params(k_params)

    action_pred, value_pred = actor_critic_forward(state, params)
    action_pred = jax.block_until_ready(action_pred)
    value_pred = jax.block_until_ready(value_pred)

    ref_act, ref_val = _reference(state, params)
    assert action_pred.shape == (B, OUTPUT_DIM)
    assert value_pred.shape == (B, 1)
    assert jnp.allclose(action_pred, ref_act, atol=1e-4, rtol=1e-4)
    assert jnp.allclose(value_pred, ref_val, atol=1e-4, rtol=1e-4)

    # Also exercise a larger, non-tile-multiple batch (partial last block path).
    B2 = 600
    state2 = jax.random.normal(jax.random.PRNGKey(1), (B2, INPUT_DIM), dtype=jnp.float32)
    act2, val2 = actor_critic_forward(state2, params)
    act2 = jax.block_until_ready(act2)
    val2 = jax.block_until_ready(val2)
    ref_act2, ref_val2 = _reference(state2, params)
    assert jnp.allclose(act2, ref_act2, atol=1e-4, rtol=1e-4)
    assert jnp.allclose(val2, ref_val2, atol=1e-4, rtol=1e-4)

    print("KERNEL_OK")
</pallas_src>

<mosaic_0001>
module attributes {stable_mosaic.version = 11 : i64} {
  func.func @_actor_critic_kernel(%arg0: i32, %arg1: memref<8x8xf32, #tpu.memory_space<vmem>>, %arg2: memref<8x256xf32, #tpu.memory_space<vmem>>, %arg3: memref<1x256xf32, #tpu.memory_space<vmem>>, %arg4: memref<1x256xf32, #tpu.memory_space<vmem>>, %arg5: memref<256x256xf32, #tpu.memory_space<vmem>>, %arg6: memref<1x256xf32, #tpu.memory_space<vmem>>, %arg7: memref<1x256xf32, #tpu.memory_space<vmem>>, %arg8: memref<256x8xf32, #tpu.memory_space<vmem>>, %arg9: memref<1x8xf32, #tpu.memory_space<vmem>>, %arg10: memref<8x8xf32, #tpu.memory_space<vmem>>) attributes {dimension_semantics = [#tpu.dimension_semantics<parallel>], iteration_bounds = array<i64: 1>, scalar_prefetch = 0 : i64, scratch_operands = 0 : i64, tpu.core_type = #tpu.core_type<tc>, window_params = [{transform_indices = @transform_0, window_bounds = array<i64: 8, 8>}, {pipeline_mode = #tpu.pipeline_mode<synchronous>, transform_indices = @transform_1, window_bounds = array<i64: 8, 256>}, {pipeline_mode = #tpu.pipeline_mode<synchronous>, transform_indices = @transform_2, window_bounds = array<i64: 1, 256>}, {pipeline_mode = #tpu.pipeline_mode<synchronous>, transform_indices = @transform_3, window_bounds = array<i64: 1, 256>}, {pipeline_mode = #tpu.pipeline_mode<synchronous>, transform_indices = @transform_4, window_bounds = array<i64: 256, 256>}, {pipeline_mode = #tpu.pipeline_mode<synchronous>, transform_indices = @transform_5, window_bounds = array<i64: 1, 256>}, {pipeline_mode = #tpu.pipeline_mode<synchronous>, transform_indices = @transform_6, window_bounds = array<i64: 1, 256>}, {pipeline_mode = #tpu.pipeline_mode<synchronous>, transform_indices = @transform_7, window_bounds = array<i64: 256, 8>}, {pipeline_mode = #tpu.pipeline_mode<synchronous>, transform_indices = @transform_8, window_bounds = array<i64: 1, 8>}, {transform_indices = @transform_9, window_bounds = array<i64: 8, 8>}]} {
    %c0 = arith.constant 0 : index
    %c0_0 = arith.constant 0 : index
    %0 = vector.load %arg1[%c0, %c0_0] : memref<8x8xf32, #tpu.memory_space<vmem>>, vector<8x8xf32>
    %c0_1 = arith.constant 0 : index
    %c0_2 = arith.constant 0 : index
    %1 = vector.load %arg2[%c0_1, %c0_2] : memref<8x256xf32, #tpu.memory_space<vmem>>, vector<8x256xf32>
    %cst = arith.constant dense<0.000000e+00> : vector<8x256xf32>
    %2 = tpu.matmul %0, %1, %cst {dimension_numbers = #tpu.dot_dimension_numbers<[1], [0], [0], [1], [0, 0, 1, 1], [], []>} : vector<8x8xf32>, vector<8x256xf32>, vector<8x256xf32> -> vector<8x256xf32>
    %c0_3 = arith.constant 0 : index
    %c0_4 = arith.constant 0 : index
    %3 = vector.load %arg3[%c0_3, %c0_4] : memref<1x256xf32, #tpu.memory_space<vmem>>, vector<1x256xf32>
    %4 = vector.broadcast %3 : vector<1x256xf32> to vector<8x256xf32>
    %5 = arith.addf %2, %4 : vector<8x256xf32>
    %cst_5 = arith.constant 0.000000e+00 : f32
    %6 = vector.broadcast %cst_5 : f32 to vector<8x256xf32>
    %7 = arith.cmpf oge, %5, %6 : vector<8x256xf32>
    %c0_6 = arith.constant 0 : index
    %c0_7 = arith.constant 0 : index
    %8 = vector.load %arg4[%c0_6, %c0_7] : memref<1x256xf32, #tpu.memory_space<vmem>>, vector<1x256xf32>
    %9 = vector.broadcast %8 : vector<1x256xf32> to vector<8x256xf32>
    %10 = arith.mulf %9, %5 : vector<8x256xf32>
    %11 = arith.select %7, %5, %10 : vector<8x256xi1>, vector<8x256xf32>
    %c0_8 = arith.constant 0 : index
    %c0_9 = arith.constant 0 : index
    %12 = vector.load %arg5[%c0_8, %c0_9] : memref<256x256xf32, #tpu.memory_space<vmem>>, vector<256x256xf32>
    %cst_10 = arith.constant dense<0.000000e+00> : vector<8x256xf32>
    %13 = tpu.matmul %11, %12, %cst_10 {dimension_numbers = #tpu.dot_dimension_numbers<[1], [0], [0], [1], [0, 0, 1, 1], [], []>} : vector<8x256xf32>, vector<256x256xf32>, vector<8x256xf32> -> vector<8x256xf32>
    %c0_11 = arith.constant 0 : index
    %c0_12 = arith.constant 0 : index
    %14 = vector.load %arg6[%c0_11, %c0_12] : memref<1x256xf32, #tpu.memory_space<vmem>>, vector<1x256xf32>
    %15 = vector.broadcast %14 : vector<1x256xf32> to vector<8x256xf32>
    %16 = arith.addf %13, %15 : vector<8x256xf32>
    %cst_13 = arith.constant 0.000000e+00 : f32
    %17 = vector.broadcast %cst_13 : f32 to vector<8x256xf32>
    %18 = arith.cmpf oge, %16, %17 : vector<8x256xf32>
    %c0_14 = arith.constant 0 : index
    %c0_15 = arith.constant 0 : index
    %19 = vector.load %arg7[%c0_14, %c0_15] : memref<1x256xf32, #tpu.memory_space<vmem>>, vector<1x256xf32>
    %20 = vector.broadcast %19 : vector<1x256xf32> to vector<8x256xf32>
    %21 = arith.mulf %20, %16 : vector<8x256xf32>
    %22 = arith.select %18, %16, %21 : vector<8x256xi1>, vector<8x256xf32>
    %c0_16 = arith.constant 0 : index
    %c0_17 = arith.constant 0 : index
    %23 = vector.load %arg8[%c0_16, %c0_17] : memref<256x8xf32, #tpu.memory_space<vmem>>, vector<256x8xf32>
    %cst_18 = arith.constant dense<0.000000e+00> : vector<8x8xf32>
    %24 = tpu.matmul %22, %23, %cst_18 {dimension_numbers = #tpu.dot_dimension_numbers<[1], [0], [0], [1], [0, 0, 1, 1], [], []>} : vector<8x256xf32>, vector<256x8xf32>, vector<8x8xf32> -> vector<8x8xf32>
    %c0_19 = arith.constant 0 : index
    %c0_20 = arith.constant 0 : index
    %25 = vector.load %arg9[%c0_19, %c0_20] : memref<1x8xf32, #tpu.memory_space<vmem>>, vector<1x8xf32>
    %26 = vector.broadcast %25 : vector<1x8xf32> to vector<8x8xf32>
    %27 = arith.addf %24, %26 : vector<8x8xf32>
    %c0_21 = arith.constant 0 : index
    %c0_22 = arith.constant 0 : index
    %28 = vector.load %arg10[%c0_21, %c0_22] : memref<8x8xf32, #tpu.memory_space<vmem>>, vector<8x8xf32>
    tpu.vector_store %arg10[%c0_21, %c0_22], %27 {strides = array<i32>} : memref<8x8xf32, #tpu.memory_space<vmem>>, vector<8x8xf32>,
    return
  }
  func.func @transform_0(%arg0: i32) -> (i32, i32) {
    %c0_i32 = arith.constant 0 : i32
    %c0_i32_0 = arith.constant 0 : i32
    return %arg0, %c0_i32 : i32, i32
  }
  func.func @transform_1(%arg0: i32) -> (i32, i32) {
    %c0_i32 = arith.constant 0 : i32
    %c0_i32_0 = arith.constant 0 : i32
    %c0_i32_1 = arith.constant 0 : i32
    return %c0_i32, %c0_i32_0 : i32, i32
  }
  func.func @transform_2(%arg0: i32) -> (i32, i32) {
    %c0_i32 = arith.constant 0 : i32
    %c0_i32_0 = arith.constant 0 : i32
    %c0_i32_1 = arith.constant 0 : i32
    return %c0_i32, %c0_i32_0 : i32, i32
  }
  func.func @transform_3(%arg0: i32) -> (i32, i32) {
    %c0_i32 = arith.constant 0 : i32
    %c0_i32_0 = arith.constant 0 : i32
    %c0_i32_1 = arith.constant 0 : i32
    return %c0_i32, %c0_i32_0 : i32, i32
  }
  func.func @transform_4(%arg0: i32) -> (i32, i32) {
    %c0_i32 = arith.constant 0 : i32
    %c0_i32_0 = arith.constant 0 : i32
    %c0_i32_1 = arith.constant 0 : i32
    return %c0_i32, %c0_i32_0 : i32, i32
  }
  func.func @transform_5(%arg0: i32) -> (i32, i32) {
    %c0_i32 = arith.constant 0 : i32
    %c0_i32_0 = arith.constant 0 : i32
    %c0_i32_1 = arith.constant 0 : i32
    return %c0_i32, %c0_i32_0 : i32, i32
  }
  func.func @transform_6(%arg0: i32) -> (i32, i32) {
    %c0_i32 = arith.constant 0 : i32
    %c0_i32_0 = arith.constant 0 : i32
    %c0_i32_1 = arith.constant 0 : i32
    return %c0_i32, %c0_i32_0 : i32, i32
  }
  func.func @transform_7(%arg0: i32) -> (i32, i32) {
    %c0_i32 = arith.constant 0 : i32
    %c0_i32_0 = arith.constant 0 : i32
    %c0_i32_1 = arith.constant 0 : i32
    return %c0_i32, %c0_i32_0 : i32, i32
  }
  func.func @transform_8(%arg0: i32) -> (i32, i32) {
    %c0_i32 = arith.constant 0 : i32
    %c0_i32_0 = arith.constant 0 : i32
    %c0_i32_1 = arith.constant 0 : i32
    return %c0_i32, %c0_i32_0 : i32, i32
  }
  func.func @transform_9(%arg0: i32) -> (i32, i32) {
    %c0_i32 = arith.constant 0 : i32
    %c0_i32_0 = arith.constant 0 : i32
    return %arg0, %c0_i32 : i32, i32
  }
}

</mosaic_0001>

<bundles_post_ra>
// kernel: tpu_custom_call.1
= control target key start
LH: loop header
LB: loop body
LE: loop exit
PB: predicated region body
PF: predicated region fallthrough
CT: control target
= control target key end

     0   :  { %14 = vsyncpa [#allocation3], 0  ;;  %s838_s0 = inlined_call_operand.vmem [shape: f32[2,8], index: 0, kind: input, shape index: {}]   ;;  %s839_s1 = inlined_call_operand.vmem [shape: f32[8,256], index: 1, kind: input, shape index: {}]   ;;  %s840_s2 = inlined_call_operand.vmem [shape: f32[1,256], index: 2, kind: input, shape index: {}]   ;;  %s841_s3 = inlined_call_operand.vmem [shape: f32[1,256], index: 3, kind: input, shape index: {}]   ;;  %s842_s4 = inlined_call_operand.hbm [shape: f32[256,256], index: 4, kind: input, shape index: {}]   ;;  %s843_s5 = inlined_call_operand.vmem [shape: f32[1,256], index: 5, kind: input, shape index: {}]   ;;  %s844_s6 = inlined_call_operand.vmem [shape: f32[1,256], index: 6, kind: input, shape index: {}]   ;;  %s845_s7 = inlined_call_operand.vmem [shape: f32[256,8], index: 7, kind: input, shape index: {}]   ;;  %s846_s8 = inlined_call_operand.vmem [shape: f32[1,8], index: 8, kind: input, shape index: {}]   ;;  %s847_s9 = inlined_call_operand.hbm [shape: f32[2,8], index: 9, kind: output, shape index: {}]  }
   0x1   :  { %15 = vsyncpa [#allocation4], 0  ;;  %s635_s30 = smov [#allocation2]   ;;  %s587_s13 = scalar_lea.hbm %s842_s4, 8192 }
   0x2   :  { %s29_s10 = sshll.u32 %s635_s30, 4  ;;  %p588_p0 = scmp.ne.s32.totalorder %s842_s4, %s587_s13  ;;  %s30_s10 = int_to_ptr.vmem [resolvable:$true] %s29_s10 }
   0x3   :  { %p591_p1 = scmp.lt.u32.totalorder %s587_s13, %s842_s4 }
   0x5   :  { %p593_p2 = pnand %p591_p1, %p588_p0 }
   0x7   :  { %596 = shalt.err (!%p593_p2)
}
   0x8   :  { %s597_s18 = scalar_lea.vmem %s30_s10, 8192  ;;  %p602_p4 = scmp.lt.s32.totalorder %s30_s10, %s30_s10 }
   0x9   :  { %p598_p3 = scmp.ne.s32.totalorder %s30_s10, %s597_s18  ;;  %p603_p5 = scmp.lt.s32.totalorder %s597_s18, %s597_s18 }
   0xb   :  { %p604_p6 = por %p603_p5, %p602_p4 }
   0xd   :  { %p605_p7 = pnand %p604_p6, %p598_p3 }
   0xf   :  { %608 = shalt.err (!%p605_p7)
}
  0x10   :  { %s636_s19 = smov 256   ;;  %s637_s20 = smov 16  }
  0x11   :  { %35 = dma.hbm_to_vmem [thread:$0]  %s842_s4, 8192, %s30_s10, [#allocation3], %s636_s19, %s636_s19, %s637_s20  }
  0x12   :  { %631 = dma.done.wait [#allocation3], 8192  }
  0x13   :  { %632 = vsyncadd [#allocation3], 4294959104  ;;  %v638_v0 = vmov 0.0   ;;  %v49_v1 = vld [vmem:[%s839_s1 + $0x8] sm:$0xff]  ;;  %v48_v2 = vld [vmem:[%s839_s1] sm:$0xff]  ;;  %vm62_vm0 = vcmask 64512  }
  0x14   :  { %130 = vmatprep.mubr.f32.mxu0 %v638_v0  ;;  %v47_v3 = vld [vmem:[%s838_s0] sm:$0xff]  ;;  %66 = vmatprep.subr.mxu0 %v49_v1  ;;  %v156_v4 = vld [vmem:[#allocation2 + $0x8] sm:$0xff]  ;;  %v158_v5 = vld [vmem:[#allocation2 + $0x18] sm:$0xff] }
  0x15   :  { %v155_v6 = vld [vmem:[#allocation2] sm:$0xff]  ;;  %67 = vmatpush1.msra.mxu0 %v48_v2  ;;  %v484_v7 = vpack.c.bf16 %v158_v5, %v156_v4  ;;  %v157_v8 = vld [vmem:[#allocation2 + $0x10] sm:$0xff]  ;;  %v160_v9 = vld [vmem:[#allocation2 + $0x28] sm:$0xff] }
  0x16   :  { %v162_v10 = vld [vmem:[#allocation2 + $0x38] sm:$0xff]  ;;  %447 = vmatmul.mubr.msk.f32.vlgmr.msra.gmra.mrb[0].mxu0 %vm62_vm0, %v47_v3  ;;  %v486_v11 = vpack.c.bf16 %v157_v8, %v155_v6  ;;  %v159_v13 = vld [vmem:[#allocation2 + $0x20] sm:$0xff]  ;;  %v161_v14 = vld [vmem:[#allocation2 + $0x30] sm:$0xff] }
  0x17   :  { %v488_v12 = vpack.c.bf16 %v162_v10, %v160_v9  ;;  %v164_v15 = vld [vmem:[#allocation2 + $0x48] sm:$0xff]  ;;  %485 = vmatprep.subr.bf16.mxu1 %v484_v7  ;;  %v166_v16 = vld [vmem:[#allocation2 + $0x58] sm:$0xff]  ;;  %v490_v17 = vpack.c.bf16 %v161_v14, %v159_v13  ;;  %v163_v19 = vld [vmem:[#allocation2 + $0x40] sm:$0xff] }
  0x18   :  { %487 = vmatpush1.bf16.msra.mxu1 %v486_v11  ;;  %v492_v18 = vpack.c.bf16 %v166_v16, %v164_v15  ;;  %v165_v20 = vld [vmem:[#allocation2 + $0x50] sm:$0xff]  ;;  %v168_v21 = vld [vmem:[#allocation2 + $0x68] sm:$0xff]  ;;  %v170_v22 = vld [vmem:[#allocation2 + $0x78] sm:$0xff] }
  0x19   :  { %489 = vmatprep.subr.bf16.mxu1 %v488_v12  ;;  %v494_v23 = vpack.c.bf16 %v165_v20, %v163_v19  ;;  %v496_v24 = vpack.c.bf16 %v170_v22, %v168_v21  ;;  %v167_v25 = vld [vmem:[#allocation2 + $0x60] sm:$0xff]  ;;  %v169_v26 = vld [vmem:[#allocation2 + $0x70] sm:$0xff]  ;;  %v172_v27 = vld [vmem:[#allocation2 + $0x88] sm:$0xff] }
  0x1a   :  { %v174_v28 = vld [vmem:[#allocation2 + $0x98] sm:$0xff]  ;;  %v498_v29 = vpack.c.bf16 %v169_v26, %v167_v25  ;;  %v171_v31 = vld [vmem:[#allocation2 + $0x80] sm:$0xff]  ;;  %v173_v32 = vld [vmem:[#allocation2 + $0x90] sm:$0xff] }
  0x1b   :  { %v500_v30 = vpack.c.bf16 %v174_v28, %v172_v27  ;;  %v176_v33 = vld [vmem:[#allocation2 + $0xa8] sm:$0xff]  ;;  %v178_v34 = vld [vmem:[#allocation2 + $0xb8] sm:$0xff]  ;;  %v502_v35 = vpack.c.bf16 %v173_v32, %v171_v31  ;;  %v175_v37 = vld [vmem:[#allocation2 + $0xa0] sm:$0xff] }
  0x1c   :  { %491 = vmatpush1.bf16.msra.mxu1 %v490_v17  ;;  %v504_v36 = vpack.c.bf16 %v178_v34, %v176_v33  ;;  %v177_v38 = vld [vmem:[#allocation2 + $0xb0] sm:$0xff]  ;;  %v180_v39 = vld [vmem:[#allocation2 + $0xc8] sm:$0xff]  ;;  %v182_v40 = vld [vmem:[#allocation2 + $0xd8] sm:$0xff] }
  0x1d   :  { %493 = vmatprep.subr.bf16.mxu1 %v492_v18  ;;  %v506_v41 = vpack.c.bf16 %v177_v38, %v175_v37  ;;  %v508_v42 = vpack.c.bf16 %v182_v40, %v180_v39  ;;  %v179_v43 = vld [vmem:[#allocation2 + $0xc0] sm:$0xff]  ;;  %v181_v44 = vld [vmem:[#allocation2 + $0xd0] sm:$0xff]  ;;  %v184_v45 = vld [vmem:[#allocation2 + $0xe8] sm:$0xff] }
  0x1e   :  { %v186_v46 = vld [vmem:[#allocation2 + $0xf8] sm:$0xff]  ;;  %v510_v47 = vpack.c.bf16 %v181_v44, %v179_v43  ;;  %v183_v49 = vld [vmem:[#allocation2 + $0xe0] sm:$0xff]  ;;  %v185_v50 = vld [vmem:[#allocation2 + $0xf0] sm:$0xff] }
  0x1f   :  { %v512_v48 = vpack.c.bf16 %v186_v46, %v184_v45  ;;  %v188_v51 = vld [vmem:[#allocation2 + $0x108] sm:$0xff]  ;;  %v190_v52 = vld [vmem:[#allocation2 + $0x118] sm:$0xff]  ;;  %v514_v53 = vpack.c.bf16 %v185_v50, %v183_v49  ;;  %v187_v55 = vld [vmem:[#allocation2 + $0x100] sm:$0xff] }
  0x20   :  { %495 = vmatpush1.bf16.msra.mxu1 %v494_v23  ;;  %v516_v54 = vpack.c.bf16 %v190_v52, %v188_v51  ;;  %v189_v56 = vld [vmem:[#allocation2 + $0x110] sm:$0xff]  ;;  %v192_v57 = vld [vmem:[#allocation2 + $0x128] sm:$0xff]  ;;  %v194_v58 = vld [vmem:[#allocation2 + $0x138] sm:$0xff] }
  0x21   :  { %497 = vmatprep.subr.bf16.mxu1 %v496_v24  ;;  %v518_v59 = vpack.c.bf16 %v189_v56, %v187_v55  ;;  %v520_v60 = vpack.c.bf16 %v194_v58, %v192_v57  ;;  %v191_v61 = vld [vmem:[#allocation2 + $0x120] sm:$0xff]  ;;  %v193_v62 = vld [vmem:[#allocation2 + $0x130] sm:$0xff]  ;;  %v196_v63 = vld [vmem:[#allocation2 + $0x148] sm:$0xff] }
  0x22   :  { %v198_v0 = vld [vmem:[#allocation2 + $0x158] sm:$0xff]  ;;  %v522_v1 = vpack.c.bf16 %v193_v62, %v191_v61  ;;  %v195_v3 = vld [vmem:[#allocation2 + $0x140] sm:$0xff]  ;;  %v197_v4 = vld [vmem:[#allocation2 + $0x150] sm:$0xff] }
  0x23   :  { %v524_v2 = vpack.c.bf16 %v198_v0, %v196_v63  ;;  %v200_v5 = vld [vmem:[#allocation2 + $0x168] sm:$0xff]  ;;  %v202_v6 = vld [vmem:[#allocation2 + $0x178] sm:$0xff]  ;;  %v526_v7 = vpack.c.bf16 %v197_v4, %v195_v3  ;;  %v199_v9 = vld [vmem:[#allocation2 + $0x160] sm:$0xff] }
  0x24   :  { %499 = vmatpush1.bf16.msra.mxu1 %v498_v29  ;;  %v528_v8 = vpack.c.bf16 %v202_v6, %v200_v5  ;;  %v201_v10 = vld [vmem:[#allocation2 + $0x170] sm:$0xff]  ;;  %v204_v11 = vld [vmem:[#allocation2 + $0x188] sm:$0xff]  ;;  %v206_v12 = vld [vmem:[#allocation2 + $0x198] sm:$0xff] }
  0x25   :  { %501 = vmatprep.subr.bf16.mxu1 %v500_v30  ;;  %v530_v13 = vpack.c.bf16 %v201_v10, %v199_v9  ;;  %v532_v14 = vpack.c.bf16 %v206_v12, %v204_v11  ;;  %v203_v15 = vld [vmem:[#allocation2 + $0x180] sm:$0xff]  ;;  %v205_v16 = vld [vmem:[#allocation2 + $0x190] sm:$0xff]  ;;  %v208_v17 = vld [vmem:[#allocation2 + $0x1a8] sm:$0xff] }
  0x26   :  { %v210_v18 = vld [vmem:[#allocation2 + $0x1b8] sm:$0xff]  ;;  %v534_v19 = vpack.c.bf16 %v205_v16, %v203_v15  ;;  %v207_v21 = vld [vmem:[#allocation2 + $0x1a0] sm:$0xff]  ;;  %v209_v22 = vld [vmem:[#allocation2 + $0x1b0] sm:$0xff] }
  0x27   :  { %v536_v20 = vpack.c.bf16 %v210_v18, %v208_v17  ;;  %v538_v23 = vpack.c.bf16 %v209_v22, %v207_v21  ;;  %v212_v24 = vld [vmem:[#allocation2 + $0x1c8] sm:$0xff]  ;;  %v214_v25 = vld [vmem:[#allocation2 + $0x1d8] sm:$0xff]  ;;  %v211_v27 = vld [vmem:[#allocation2 + $0x1c0] sm:$0xff] }
  0x28   :  { %503 = vmatpush1.bf16.msra.mxu1 %v502_v35  ;;  %v540_v26 = vpack.c.bf16 %v214_v25, %v212_v24  ;;  %v213_v28 = vld [vmem:[#allocation2 + $0x1d0] sm:$0xff]  ;;  %v216_v30 = vld [vmem:[#allocation2 + $0x1e8] sm:$0xff]  ;;  %v218_v31 = vld [vmem:[#allocation2 + $0x1f8] sm:$0xff] }
  0x29   :  { %505 = vmatprep.subr.bf16.mxu1 %v504_v36  ;;  %v542_v29 = vpack.c.bf16 %v213_v28, %v211_v27  ;;  %v544_v32 = vpack.c.bf16 %v218_v31, %v216_v30  ;;  %v215_v33 = vld [vmem:[#allocation2 + $0x1e0] sm:$0xff]  ;;  %v217_v34 = vld [vmem:[#allocation2 + $0x1f0] sm:$0xff]  ;;  %v337_v37 = vld [vmem:[%s845_s7 + $0x88] sm:$0xff] }
  0x2a   :  { %v546_v35 = vpack.c.bf16 %v217_v34, %v215_v33  ;;  %v336_v36 = vld [vmem:[%s845_s7 + $0x80] sm:$0xff]  ;;  %v321_v40 = vld [vmem:[%s845_s7 + $0x8] sm:$0xff]  ;;  %v322_v45 = vld [vmem:[%s845_s7 + $0x10] sm:$0xff] }
  0x2b   :  { %v320_v38 = vld [vmem:[%s845_s7] sm:$0xff]  ;;  %v548_v39 = vpack.c.bf16 %v337_v37, %v336_v36  ;;  %v323_v46 = vld [vmem:[%s845_s7 + $0x18] sm:$0xff]  ;;  %v325_v52 = vld [vmem:[%s845_s7 + $0x28] sm:$0xff] }
  0x2c   :  { %507 = vmatpush1.bf16.msra.mxu1 %v506_v41  ;;  %v338_v41 = vld [vmem:[%s845_s7 + $0x90] sm:$0xff]  ;;  %v550_v43 = vpack.c.bf16 %v321_v40, %v320_v38  ;;  %v554_v49 = vpack.c.bf16 %v323_v46, %v322_v45  ;;  %v324_v51 = vld [vmem:[%s845_s7 + $0x20] sm:$0xff]  ;;  %v327_v58 = vld [vmem:[%s845_s7 + $0x38] sm:$0xff] }
  0x2d   :  { %509 = vmatprep.subr.bf16.mxu1 %v508_v42  ;;  %v339_v42 = vld [vmem:[%s845_s7 + $0x98] sm:$0xff]  ;;  %549 = vmatprep.subr.bf16.mxu0 %v548_v39  ;;  %v558_v55 = vpack.c.bf16 %v325_v52, %v324_v51  ;;  %v326_v57 = vld [vmem:[%s845_s7 + $0x30] sm:$0xff]  ;;  %v328_v63 = vld [vmem:[%s845_s7 + $0x40] sm:$0xff] }
  0x2e   :  { %v552_v44 = vpack.c.bf16 %v339_v42, %v338_v41  ;;  %551 = vmatpush3.bf16.msra.mxu0 %v550_v43  ;;  %v562_v61 = vpack.c.bf16 %v327_v58, %v326_v57  ;;  %v329_v0 = vld [vmem:[%s845_s7 + $0x48] sm:$0xff]  ;;  %v330_v5 = vld [vmem:[%s845_s7 + $0x50] sm:$0xff]  ;;  %v331_v6 = vld [vmem:[%s845_s7 + $0x58] sm:$0xff] }
  0x2f   :  { %v566_v3 = vpack.c.bf16 %v329_v0, %v328_v63  ;;  %v50_v11 = vld [vmem:[%s840_s2] sm:$0x3]  ;;  %v349_v27 = vld [vmem:[%s845_s7 + $0xe8] sm:$0xff]  ;;  %v351_v33 = vld [vmem:[%s845_s7 + $0xf8] sm:$0xff] }
  0x30   :  { %511 = vmatpush1.bf16.msra.mxu1 %v510_v47  ;;  %v340_v47 = vld [vmem:[%s845_s7 + $0xa0] sm:$0xff]  ;;  %553 = vmatprep.subr.bf16.mxu0 %v552_v44  ;;  %v333_v30 = vld [vmem:[%s845_s7 + $0x68] sm:$0xff]  ;;  %v335_v36 = vld [vmem:[%s845_s7 + $0x78] sm:$0xff] }
  0x31   :  { %513 = vmatprep.subr.bf16.mxu1 %v512_v48  ;;  %v341_v48 = vld [vmem:[%s845_s7 + $0xa8] sm:$0xff]  ;;  %v219_v38 = vld [vmem:[%s843_s5] sm:$0x3] }
  0x32   :  { %v556_v50 = vpack.c.bf16 %v341_v48, %v340_v47  ;;  %555 = vmatpush3.bf16.msra.mxu0 %v554_v49  ;;  %v304_v39 = vld [vmem:[%s844_s6] sm:$0x3] }
  0x34   :  { %515 = vmatpush1.bf16.msra.mxu1 %v514_v53  ;;  %v342_v53 = vld [vmem:[%s845_s7 + $0xb0] sm:$0xff]  ;;  %557 = vmatprep.subr.bf16.mxu0 %v556_v50 }
  0x35   :  { %517 = vmatprep.subr.bf16.mxu1 %v516_v54  ;;  %v343_v54 = vld [vmem:[%s845_s7 + $0xb8] sm:$0xff] }
  0x36   :  { %v560_v56 = vpack.c.bf16 %v343_v54, %v342_v53  ;;  %559 = vmatpush3.bf16.msra.mxu0 %v558_v55  ;;  %v448_v53 = vld [vmem:[%s846_s8] ss:$0 sm:$0xff] }
  0x38   :  { %519 = vmatpush1.bf16.msra.mxu1 %v518_v59  ;;  %v344_v59 = vld [vmem:[%s845_s7 + $0xc0] sm:$0xff]  ;;  %561 = vmatprep.subr.bf16.mxu0 %v560_v56 }
  0x39   :  { %521 = vmatprep.subr.bf16.mxu1 %v520_v60  ;;  %v345_v60 = vld [vmem:[%s845_s7 + $0xc8] sm:$0xff] }
  0x3a   :  { %v564_v62 = vpack.c.bf16 %v345_v60, %v344_v59  ;;  %563 = vmatpush3.bf16.msra.mxu0 %v562_v61 }
  0x3c   :  { %523 = vmatpush1.bf16.msra.mxu1 %v522_v1  ;;  %v346_v1 = vld [vmem:[%s845_s7 + $0xd0] sm:$0xff]  ;;  %565 = vmatprep.subr.bf16.mxu0 %v564_v62 }
  0x3d   :  { %525 = vmatprep.subr.bf16.mxu1 %v524_v2  ;;  %v347_v2 = vld [vmem:[%s845_s7 + $0xd8] sm:$0xff] }
  0x3e   :  { %v568_v4 = vpack.c.bf16 %v347_v2, %v346_v1  ;;  %567 = vmatpush3.bf16.msra.mxu0 %v566_v3 }
  0x40   :  { %527 = vmatpush1.bf16.msra.mxu1 %v526_v7  ;;  %v570_v7 = vpack.c.bf16 %v331_v6, %v330_v5  ;;  %569 = vmatprep.subr.bf16.mxu0 %v568_v4 }
  0x41   :  { %529 = vmatprep.subr.bf16.mxu1 %v528_v8  ;;  %v52_v8 = vlaneseq }
  0x42   :  { %571 = vmatpush3.bf16.msra.mxu0 %v570_v7 }
  0x43   :  { %v53_v9 = vshrl.u32 %v52_v8, 7 }
  0x44   :  { %531 = vmatpush1.bf16.msra.mxu1 %v530_v13  ;;  %v139_v13 = vld [vmem:[%s841_s3] sm:$0x3] }
  0x45   :  { %533 = vmatprep.subr.bf16.mxu1 %v532_v14  ;;  %v54_v10 = vsub.s32 0, %v53_v9  ;;  %v58_v12 = vsub.s32 1, %v53_v9 }
  0x47   :  { %v55_v14 = vrot.slane %v50_v11, %v54_v10  ;;  %v59_v15 = vrot.slane %v50_v11, %v58_v12  ;;  %v144_v16 = vrot.slane %v139_v13, %v54_v10  ;;  %v148_v18 = vrot.slane %v139_v13, %v58_v12 }
  0x48   :  { %535 = vmatpush1.bf16.msra.mxu1 %v534_v19  ;;  %v224_v40 = vrot.slane %v219_v38, %v54_v10  ;;  %v228_v41 = vrot.slane %v219_v38, %v58_v12  ;;  %v309_v42 = vrot.slane %v304_v39, %v54_v10  ;;  %v313_v44 = vrot.slane %v304_v39, %v58_v12 }
  0x49   :  { %537 = vmatprep.subr.bf16.mxu1 %v536_v20 }
  0x4c   :  { %539 = vmatpush1.bf16.msra.mxu1 %v538_v23 }
  0x4d   :  { %541 = vmatprep.subr.bf16.mxu1 %v540_v26  ;;  %v348_v26 = vld [vmem:[%s845_s7 + $0xe0] sm:$0xff] }
  0x4e   :  { %v572_v28 = vpack.c.bf16 %v349_v27, %v348_v26 }
  0x50   :  { %543 = vmatpush1.bf16.msra.mxu1 %v542_v29  ;;  %v332_v29 = vld [vmem:[%s845_s7 + $0x60] sm:$0xff]  ;;  %573 = vmatprep.subr.bf16.mxu0 %v572_v28 }
  0x51   :  { %545 = vmatprep.subr.bf16.mxu1 %v544_v32  ;;  %v574_v31 = vpack.c.bf16 %v333_v30, %v332_v29  ;;  %v350_v32 = vld [vmem:[%s845_s7 + $0xf0] sm:$0xff] }
  0x52   :  { %v576_v34 = vpack.c.bf16 %v351_v33, %v350_v32 }
  0x53   :  { %575 = vmatpush3.bf16.msra.mxu0 %v574_v31 }
  0x54   :  { %547 = vmatpush1.bf16.msra.mxu1 %v546_v35  ;;  %v334_v35 = vld [vmem:[%s845_s7 + $0x70] sm:$0xff]  ;;  %577 = vmatprep.subr.bf16.mxu0 %v576_v34 }
  0x55   :  { %v578_v37 = vpack.c.bf16 %v335_v36, %v334_v35 }
  0x57   :  { %579 = vmatpush3.bf16.msra.mxu0 %v578_v37 }
  0xe9   :  { %v132_v17 = vpop.f32.mrb[0].mxu0 }
  0xea   :  { %v133_v19 = vadd.f32 %v132_v17, %v55_v14  ;;  %v134_v20 = vpop.f32.mrb[1].mxu0 }
  0xeb   :  { %v135_v21 = vadd.f32 %v134_v20, %v59_v15 }
  0xec   :  { %v151_v22 = vmul.f32 %v144_v16, %v133_v19  ;;  %vm137_vm2 = vcmp.ge.f32.partialorder %v133_v19, 0.0 }
  0xed   :  { %vm138_vm1 = vcmp.ge.f32.partialorder %v135_v21, 0.0  ;;  %v152_v23 = vmul.f32 %v148_v18, %v135_v21 }
  0xee   :  { %v153_v25 = vsel %vm137_vm2, %v133_v19, %v151_v22 }
  0xef   :  { %v154_v24 = vsel %vm138_vm1, %v135_v21, %v152_v23 }
  0xf0   :  { %295 = vmatprep.mubr.f32.mxu1 %v154_v24 }
  0xf1   :  { %296 = vmatmul.mubr.f32.vlgmr.msra.gmra.mrb[0].mxu1 %v153_v25 }
 0x1c4   :  { %v297_v43 = vpop.f32.mrb[0].mxu1 }
 0x1c5   :  { %v298_v45 = vadd.f32 %v297_v43, %v224_v40  ;;  %v299_v46 = vpop.f32.mrb[1].mxu1 }
 0x1c6   :  { %v300_v47 = vadd.f32 %v299_v46, %v228_v41 }
 0x1c7   :  { %v316_v48 = vmul.f32 %v309_v42, %v298_v45  ;;  %vm302_vm3 = vcmp.ge.f32.partialorder %v298_v45, 0.0 }
 0x1c8   :  { %v317_v49 = vmul.f32 %v313_v44, %v300_v47  ;;  %vm303_vm4 = vcmp.ge.f32.partialorder %v300_v47, 0.0 }
 0x1c9   :  { %v318_v51 = vsel %vm302_vm3, %v298_v45, %v316_v48 }
 0x1ca   :  { %v319_v50 = vsel %vm303_vm4, %v300_v47, %v317_v49 }
 0x1cb   :  { %423 = vmatprep.mubr.f32.mxu0 %v319_v50 }
 0x1cc   :  { %424 = vmatmul.mubr.f32.vlgmr.msra.gmra.mrb[2].mxu0 %v318_v51 }
 0x29f   :  { %v481_v52 = vpop.f32.mrb[2].mxu0 }
 0x2a0   :  { %v482_v54 = vpop.f32.mrb[3].mxu0 }
 0x2a1   :  { %v483_v55 = vadd.f32 %v482_v54, %v481_v52 }
 0x2a3   :  { %v426_v56 = vadd.f32 %v483_v55, %v448_v53 }
 0x2a5   :  { %429 = vst.msk [vmem:[#allocation5] sm:$0xff] %vm62_vm0, %v426_v56 }
 0x2a6   :  { %434 = vsyncadd [#allocation4], 96  ;;  %s639_s6 = smov [#allocation5]  }
 0x2a7   :  { %s435_s27 = sshll.u32 %s639_s6, 4  ;;  %s436_s27 = int_to_ptr.vmem [resolvable:$true] %s435_s27 }
 0x2a8   :  { %s609_s28 = scalar_lea.vmem %s436_s27, 32  ;;  %s613_s0 = scalar_lea.vmem %s436_s27, 128 }
 0x2a9   :  { %p610_p8 = scmp.ne.s32.totalorder %s436_s27, %s609_s28  ;;  %p614_p9 = scmp.lt.s32.totalorder %s436_s27, %s436_s27 }
 0x2aa   :  { %p615_p10 = scmp.lt.s32.totalorder %s613_s0, %s609_s28 }
 0x2ac   :  { %p616_p11 = por %p615_p10, %p614_p9 }
 0x2ae   :  { %p617_p12 = pnand %p616_p11, %p610_p8 }
 0x2b0   :  { %620 = shalt.err (!%p617_p12)
}
 0x2b1   :  { %s621_s8 = scalar_lea.hbm %s847_s9, 32 }
 0x2b2   :  { %p622_p13 = scmp.ne.s32.totalorder %s847_s9, %s621_s8  ;;  %p625_p0 = scmp.lt.u32.totalorder %s621_s8, %s847_s9 }
 0x2b4   :  { %p627_p1 = pnand %p625_p0, %p622_p13 }
 0x2b6   :  { %630 = shalt.err (!%p627_p1)
}
 0x2b7   :  { %s640_s10 = smov 32   ;;  %s641_s11 = smov 2  }
 0x2b8   :  { %441 = dma.vmem_to_hbm [thread:$0]  %s436_s27, 32, %s847_s9, [#allocation4], %s640_s10, %s640_s10, %s641_s11  }
 0x2b9   :  { %633 = dma.done.wait [#allocation4], 128  }
 0x2ba   :  { %634 = vsyncadd [#allocation4], 4294967168 }
 0x2bb   :  { %445 = vsyncpa [#allocation3], 1 }
 0x2bc   :  { %446 = vsyncpa [#allocation4], 1 }

</bundles_post_ra>
